<compile_context>
chip_gen: v5e
topology: v5e:2x2
jax: 0.10.0
libtpu: 0.0.40
codegen_flags: <defaults>
</compile_context>

<pallas_src>
import numpy as np
import jax
import jax.numpy as jnp
from jax.experimental import pallas as pl
from jax.experimental.pallas import tpu as pltpu


def _round_up(x, m):
    return ((x + m - 1) // m) * m


def _cdiv(a, b):
    return (a + b - 1) // b


_SQRT1_2 = np.float32(0.7071067811865476)


def _gelu_exact(h):
    # torch.nn.GELU() default: exact erf formulation.
    return 0.5 * h * (1.0 + jax.lax.erf(h * _SQRT1_2))


def _mlp_kernel_single(x_ref, w1_ref, b1_ref, w2_ref, b2_ref, o_ref):
    # Whole hidden dim resident: fc1 -> GELU -> fc2 in one pass.
    x = x_ref[...].astype(w1_ref.dtype)          # in-kernel cast to compute dtype
    h = jnp.dot(x, w1_ref[...], preferred_element_type=jnp.float32) + b1_ref[...]
    h = _gelu_exact(h).astype(w2_ref.dtype)
    o = jnp.dot(h, w2_ref[...], preferred_element_type=jnp.float32) + b2_ref[...]
    # Dropout(p=0.0) is the identity (inference path).
    o_ref[...] = o.astype(o_ref.dtype)


def _mlp_kernel_htiled(x_ref, w1_ref, b1_ref, w2_ref, b2_ref, o_ref, acc_ref):
    # Hidden dim streamed in blocks along grid axis 1 ("arbitrary"); f32 accumulator.
    k = pl.program_id(1)

    @pl.when(k == 0)
    def _init():
        acc_ref[...] = jnp.zeros_like(acc_ref)

    x = x_ref[...].astype(w1_ref.dtype)
    h = jnp.dot(x, w1_ref[...], preferred_element_type=jnp.float32) + b1_ref[...]
    h = _gelu_exact(h).astype(w2_ref.dtype)
    acc_ref[...] += jnp.dot(h, w2_ref[...], preferred_element_type=jnp.float32)

    @pl.when(k == pl.num_programs(1) - 1)
    def _finalize():
        o_ref[...] = (acc_ref[...] + b2_ref[...]).astype(o_ref.dtype)


def _vmem_capacity_bytes():
    try:
        return int(pltpu.get_tpu_info().vmem_capacity_bytes)
    except Exception:
        return 64 * 1024 * 1024  # conservative fallback (v7x per-TC VMEM)


def mlp_pallas(x, w1, b1, w2, b2, *, tm=None, hidden_block=None,
               compute_dtype=jnp.bfloat16):
    """x: (B, N, C_in). w1: (C_in, H), b1: (H,), w2: (H, C_out), b2: (C_out,).

    Returns (B, N, C_out) in x.dtype. Feature dims are zero-padded to multiples of 128
    (lane-dense, exact: padded hidden columns are GELU(0)=0 and hit zero W2 rows).
    Tokens are NOT padded: the grid uses cdiv(M, tm) and the ragged last tile's
    out-of-bounds rows are computed on garbage but their writes are discarded.
    """
    orig_dtype = x.dtype
    B, N, C_in = x.shape
    ci_w, H = w1.shape
    h_w, C_out = w2.shape
    assert ci_w == C_in and h_w == H and b1.shape == (H,) and b2.shape == (C_out,)

    M = B * N
    cdt = jnp.dtype(compute_dtype)
    bpe = cdt.itemsize
    x_bpe = jnp.dtype(orig_dtype).itemsize
    out_bpe = x_bpe

    # Lane-dense feature dims.
    C_in_p = _round_up(C_in, 128)
    H_p = _round_up(H, 128)
    C_out_p = _round_up(C_out, 128)

    # ---- generation-aware VMEM budget -------------------------------------
    vmem_cap = _vmem_capacity_bytes()
    budget = int(vmem_cap * 0.82)                  # ~105 MiB on 128 MiB parts, ~52 MiB on v7x
    likely_two_tc = vmem_cap < 96 * 1024 * 1024    # 64 MiB VMEM => v7x => 2 TensorCores

    # ---- token tile (tm) and hidden block (th) selection -------------------
    tm_cap = _round_up(M, 16)
    if likely_two_tc and M >= 32:
        # keep >= 2 grid steps along tokens so both TensorCores get work
        tm_cap = min(tm_cap, max(16, _round_up(_cdiv(M, 2), 16)))
    tm_pref = tm if tm is not None else (1024 if vmem_cap >= 96 * 1024 * 1024 else 512)
    tm_pref = max(16, _round_up(tm_pref, 16))

    tm_candidates = []
    t = tm_pref
    while True:
        tm_candidates.append(min(t, tm_cap))
        if t <= 16:
            break
        t = max(16, _round_up(t // 2, 16))
    tm_candidates = sorted(set(tm_candidates), reverse=True)

    if hidden_block is not None:
        th_candidates = [min(_round_up(hidden_block, 128), H_p)]
    else:
        th_candidates = []
        t = H_p
        while True:
            th_candidates.append(t)
            if t <= 128:
                break
            nxt = _round_up(_cdiv(t, 2), 128)
            if nxt >= t:
                break
            t = nxt

    def vmem_needed(tm_c, th_c):
        n_h_c = _cdiv(H_p, th_c)
        wbuf = 1 if n_h_c == 1 else 2
        need = 2 * tm_c * C_in_p * x_bpe           # x tile (double-buffered, orig dtype)
        need += tm_c * C_in_p * bpe                # in-kernel compute-dtype copy of x
        need += wbuf * C_in_p * th_c * bpe         # W1 block(s)
        need += wbuf * th_c * 4                    # b1 block(s), f32
        need += wbuf * th_c * C_out_p * bpe        # W2 block(s)
        need += C_out_p * 4                        # b2, f32
        need += 2 * tm_c * C_out_p * out_bpe       # out tile (double-buffered, orig dtype)
        if n_h_c > 1:
            need += tm_c * C_out_p * 4             # f32 accumulator scratch
        need += tm_c * th_c * (4 + bpe)            # fc1 activation (f32 + compute copy)
        return int(need * 1.15) + (1 << 20)        # headroom for Mosaic internal scratch

    tm_eff, th_eff = tm_candidates[-1], th_candidates[-1]
    found = False
    for tm_c in tm_candidates:
        for th_c in th_candidates:
            if vmem_needed(tm_c, th_c) <= budget:
                tm_eff, th_eff = tm_c, th_c
                found = True
                break
        if found:
            break

    H_pad = _round_up(H_p, th_eff)
    n_h = H_pad // th_eff
    n_m = _cdiv(M, tm_eff)
    vmem_limit = int(min(budget, max(vmem_needed(tm_eff, th_eff), 16 * 1024 * 1024)))

    # ---- host-side padding (weights/biases tiny; x only if C_in not lane-dense) ----
    x2d = x.reshape(M, C_in)
    if C_in_p != C_in:
        # Load-bearing zero-pad: padded x columns must be 0, not garbage.
        x2d = jnp.pad(x2d, ((0, 0), (0, C_in_p - C_in)))

    w1_p = w1.astype(cdt)
    if (C_in_p - C_in) or (H_pad - H):
        w1_p = jnp.pad(w1_p, ((0, C_in_p - C_in), (0, H_pad - H)))
    w2_p = w2.astype(cdt)
    if (H_pad - H) or (C_out_p - C_out):
        w2_p = jnp.pad(w2_p, ((0, H_pad - H), (0, C_out_p - C_out)))
    b1_p = jnp.pad(b1.astype(jnp.float32), (0, H_pad - H)).reshape(1, H_pad)
    b2_p = jnp.pad(b2.astype(jnp.float32), (0, C_out_p - C_out)).reshape(1, C_out_p)

    const_buf = pl.Buffered(1)  # constant index_map => no re-DMA, no wasted 2nd buffer

    if n_h == 1:
        kernel = _mlp_kernel_single
        grid = (n_m,)
        in_specs = [
            pl.BlockSpec((tm_eff, C_in_p), lambda i: (i, 0)),                              # x tile
            pl.BlockSpec((C_in_p, H_pad), lambda i: (0, 0), pipeline_mode=const_buf),      # W1
            pl.BlockSpec((1, H_pad), lambda i: (0, 0), pipeline_mode=const_buf),           # b1
            pl.BlockSpec((H_pad, C_out_p), lambda i: (0, 0), pipeline_mode=const_buf),     # W2
            pl.BlockSpec((1, C_out_p), lambda i: (0, 0), pipeline_mode=const_buf),         # b2
        ]
        out_specs = pl.BlockSpec((tm_eff, C_out_p), lambda i: (i, 0))
        scratch_shapes = []
        dim_sem = ("parallel",)
    else:
        kernel = _mlp_kernel_htiled
        grid = (n_m, n_h)
        in_specs = [
            pl.BlockSpec((tm_eff, C_in_p), lambda i, k: (i, 0)),                           # x tile (resident over k)
            pl.BlockSpec((C_in_p, th_eff), lambda i, k: (0, k)),                           # W1 block
            pl.BlockSpec((1, th_eff), lambda i, k: (0, k)),                                # b1 block
            pl.BlockSpec((th_eff, C_out_p), lambda i, k: (k, 0)),                          # W2 block
            pl.BlockSpec((1, C_out_p), lambda i, k: (0, 0), pipeline_mode=const_buf),      # b2
        ]
        out_specs = pl.BlockSpec((tm_eff, C_out_p), lambda i, k: (i, 0))                   # accumulator-resident
        scratch_shapes = [pltpu.VMEM((tm_eff, C_out_p), jnp.float32)]
        dim_sem = ("parallel", "arbitrary")

    out2d = pl.pallas_call(
        kernel,
        out_shape=jax.ShapeDtypeStruct((M, C_out_p), orig_dtype),
        grid_spec=pltpu.PrefetchScalarGridSpec(
            num_scalar_prefetch=0,
            grid=grid,
            in_specs=in_specs,
            out_specs=out_specs,
            scratch_shapes=scratch_shapes,
        ),
        compiler_params=pltpu.CompilerParams(
            dimension_semantics=dim_sem,
            vmem_limit_bytes=vmem_limit,
        ),
    )(x2d, w1_p, b1_p, w2_p, b2_p)

    if C_out_p != C_out:
        out2d = out2d[:, :C_out]
    return out2d.reshape(B, N, C_out)   # already in x.dtype; reshape is free when C_out lane-dense


def _ref_mlp(x, w1, b1, w2, b2):
    """Plain JAX f32 reference (fc1 -> exact GELU -> fc2)."""
    B, N, C_in = x.shape
    h = x.reshape(-1, C_in) @ w1 + b1
    h = 0.5 * h * (1.0 + jax.lax.erf(h / np.sqrt(2.0)))
    return (h @ w2 + b2).reshape(B, N, w2.shape[1])


if __name__ == "__main__":
    # Small shapes consistent with the module: batch=2, seq=8, in_features=32,
    # hidden_features=64, out_features=32.
    B, N, C_in, H = 2, 8, 32, 64

    key = jax.random.PRNGKey(0)
    kx, k1, k2, k3, k4 = jax.random.split(key, 5)
    x = jax.random.normal(kx, (B, N, C_in), jnp.float32)
    w1 = jax.random.normal(k1, (C_in, H), jnp.float32) * 0.02
    b1 = jax.random.normal(k2, (H,), jnp.float32) * 0.02
    w2 = jax.random.normal(k3, (H, C_in), jnp.float32) * 0.02
    b2 = jax.random.normal(k4, (C_in,), jnp.float32) * 0.02

    out = mlp_pallas(x, w1, b1, w2, b2)
    jax.block_until_ready(out)
    ref = _ref_mlp(x, w1, b1, w2, b2)
    # Kernel runs bf16 inputs with f32 accumulation -> relaxed tolerance vs f32 ref.
    np.testing.assert_allclose(np.asarray(out), np.asarray(ref), rtol=5e-2, atol=2e-3)

    # Also exercise the hidden-dim-tiled (accumulator) path with a forced 128-wide H block.
    H2 = 256
    kk = jax.random.split(jax.random.PRNGKey(1), 4)
    w1b = jax.random.normal(kk[0], (C_in, H2), jnp.float32) * 0.02
    b1b = jax.random.normal(kk[1], (H2,), jnp.float32) * 0.02
    w2b = jax.random.normal(kk[2], (H2, C_in), jnp.float32) * 0.02
    b2b = jax.random.normal(kk[3], (C_in,), jnp.float32) * 0.02
    out2 = mlp_pallas(x, w1b, b1b, w2b, b2b, hidden_block=128)
    jax.block_until_ready(out2)
    ref2 = _ref_mlp(x, w1b, b1b, w2b, b2b)
    np.testing.assert_allclose(np.asarray(out2), np.asarray(ref2), rtol=5e-2, atol=2e-3)

    print("KERNEL_OK")
</pallas_src>

<mosaic_0001>
module attributes {stable_mosaic.version = 11 : i64} {
  func.func @_mlp_kernel_single(%arg0: i32, %arg1: memref<16x128xf32, #tpu.memory_space<vmem>>, %arg2: memref<128x128xbf16, #tpu.memory_space<vmem>>, %arg3: memref<1x128xf32, #tpu.memory_space<vmem>>, %arg4: memref<128x128xbf16, #tpu.memory_space<vmem>>, %arg5: memref<1x128xf32, #tpu.memory_space<vmem>>, %arg6: memref<16x128xf32, #tpu.memory_space<vmem>>) attributes {dimension_semantics = [#tpu.dimension_semantics<parallel>], iteration_bounds = array<i64: 1>, scalar_prefetch = 0 : i64, scratch_operands = 0 : i64, tpu.core_type = #tpu.core_type<tc>, window_params = [{transform_indices = @transform_0, window_bounds = array<i64: 16, 128>}, {pipeline_mode = #tpu.pipeline_mode<synchronous>, transform_indices = @transform_1, window_bounds = array<i64: 128, 128>}, {pipeline_mode = #tpu.pipeline_mode<synchronous>, transform_indices = @transform_2, window_bounds = array<i64: 1, 128>}, {pipeline_mode = #tpu.pipeline_mode<synchronous>, transform_indices = @transform_3, window_bounds = array<i64: 128, 128>}, {pipeline_mode = #tpu.pipeline_mode<synchronous>, transform_indices = @transform_4, window_bounds = array<i64: 1, 128>}, {transform_indices = @transform_5, window_bounds = array<i64: 16, 128>}]} {
    %c0 = arith.constant 0 : index
    %c0_0 = arith.constant 0 : index
    %0 = vector.load %arg1[%c0, %c0_0] : memref<16x128xf32, #tpu.memory_space<vmem>>, vector<16x128xf32>
    %1 = arith.truncf %0 : vector<16x128xf32> to vector<16x128xbf16>
    %c0_1 = arith.constant 0 : index
    %c0_2 = arith.constant 0 : index
    %2 = vector.load %arg2[%c0_1, %c0_2] : memref<128x128xbf16, #tpu.memory_space<vmem>>, vector<128x128xbf16>
    %cst = arith.constant dense<0.000000e+00> : vector<16x128xf32>
    %3 = tpu.matmul %1, %2, %cst {dimension_numbers = #tpu.dot_dimension_numbers<[1], [0], [0], [1], [0, 0, 1, 1], [], []>} : vector<16x128xbf16>, vector<128x128xbf16>, vector<16x128xf32> -> vector<16x128xf32>
    %c0_3 = arith.constant 0 : index
    %c0_4 = arith.constant 0 : index
    %4 = vector.load %arg3[%c0_3, %c0_4] : memref<1x128xf32, #tpu.memory_space<vmem>>, vector<1x128xf32>
    %5 = vector.broadcast %4 : vector<1x128xf32> to vector<16x128xf32>
    %6 = arith.addf %3, %5 : vector<16x128xf32>
    %cst_5 = arith.constant 5.000000e-01 : f32
    %7 = vector.broadcast %cst_5 : f32 to vector<16x128xf32>
    %8 = arith.mulf %7, %6 : vector<16x128xf32>
    %cst_6 = arith.constant 0.707106769 : f32
    %9 = vector.broadcast %cst_6 : f32 to vector<16x128xf32>
    %10 = arith.mulf %6, %9 : vector<16x128xf32>
    %11 = math.erf %10 : vector<16x128xf32>
    %cst_7 = arith.constant 1.000000e+00 : f32
    %12 = vector.broadcast %cst_7 : f32 to vector<16x128xf32>
    %13 = arith.addf %12, %11 : vector<16x128xf32>
    %14 = arith.mulf %8, %13 : vector<16x128xf32>
    %15 = arith.truncf %14 : vector<16x128xf32> to vector<16x128xbf16>
    %c0_8 = arith.constant 0 : index
    %c0_9 = arith.constant 0 : index
    %16 = vector.load %arg4[%c0_8, %c0_9] : memref<128x128xbf16, #tpu.memory_space<vmem>>, vector<128x128xbf16>
    %cst_10 = arith.constant dense<0.000000e+00> : vector<16x128xf32>
    %17 = tpu.matmul %15, %16, %cst_10 {dimension_numbers = #tpu.dot_dimension_numbers<[1], [0], [0], [1], [0, 0, 1, 1], [], []>} : vector<16x128xbf16>, vector<128x128xbf16>, vector<16x128xf32> -> vector<16x128xf32>
    %c0_11 = arith.constant 0 : index
    %c0_12 = arith.constant 0 : index
    %18 = vector.load %arg5[%c0_11, %c0_12] : memref<1x128xf32, #tpu.memory_space<vmem>>, vector<1x128xf32>
    %19 = vector.broadcast %18 : vector<1x128xf32> to vector<16x128xf32>
    %20 = arith.addf %17, %19 : vector<16x128xf32>
    %c0_13 = arith.constant 0 : index
    %c0_14 = arith.constant 0 : index
    %21 = vector.load %arg6[%c0_13, %c0_14] : memref<16x128xf32, #tpu.memory_space<vmem>>, vector<16x128xf32>
    tpu.vector_store %arg6[%c0_13, %c0_14], %20 {strides = array<i32>} : memref<16x128xf32, #tpu.memory_space<vmem>>, vector<16x128xf32>,
    return
  }
  func.func @transform_0(%arg0: i32) -> (i32, i32) {
    %c0_i32 = arith.constant 0 : i32
    %c0_i32_0 = arith.constant 0 : i32
    return %arg0, %c0_i32 : i32, i32
  }
  func.func @transform_1(%arg0: i32) -> (i32, i32) {
    %c0_i32 = arith.constant 0 : i32
    %c0_i32_0 = arith.constant 0 : i32
    %c0_i32_1 = arith.constant 0 : i32
    return %c0_i32, %c0_i32_0 : i32, i32
  }
  func.func @transform_2(%arg0: i32) -> (i32, i32) {
    %c0_i32 = arith.constant 0 : i32
    %c0_i32_0 = arith.constant 0 : i32
    %c0_i32_1 = arith.constant 0 : i32
    return %c0_i32, %c0_i32_0 : i32, i32
  }
  func.func @transform_3(%arg0: i32) -> (i32, i32) {
    %c0_i32 = arith.constant 0 : i32
    %c0_i32_0 = arith.constant 0 : i32
    %c0_i32_1 = arith.constant 0 : i32
    return %c0_i32, %c0_i32_0 : i32, i32
  }
  func.func @transform_4(%arg0: i32) -> (i32, i32) {
    %c0_i32 = arith.constant 0 : i32
    %c0_i32_0 = arith.constant 0 : i32
    %c0_i32_1 = arith.constant 0 : i32
    return %c0_i32, %c0_i32_0 : i32, i32
  }
  func.func @transform_5(%arg0: i32) -> (i32, i32) {
    %c0_i32 = arith.constant 0 : i32
    %c0_i32_0 = arith.constant 0 : i32
    return %arg0, %c0_i32 : i32, i32
  }
}

</mosaic_0001>

<bundles_post_ra>
// kernel: tpu_custom_call.1
= control target key start
LH: loop header
LB: loop body
LE: loop exit
PB: predicated region body
PF: predicated region fallthrough
CT: control target
= control target key end

     0   :  { %10 = vsyncpa [#allocation3], 0  ;;  %s624_s0 = inlined_call_operand.hbm [shape: f32[16,128], index: 0, kind: input, shape index: {}]   ;;  %s625_s1 = inlined_call_operand.hbm [shape: bf16[128,128], index: 1, kind: input, shape index: {}]   ;;  %s626_s2 = inlined_call_operand.vmem [shape: f32[1,128], index: 2, kind: input, shape index: {}]   ;;  %s627_s3 = inlined_call_operand.hbm [shape: bf16[128,128], index: 3, kind: input, shape index: {}]   ;;  %s628_s4 = inlined_call_operand.vmem [shape: f32[1,128], index: 4, kind: input, shape index: {}]   ;;  %s629_s5 = inlined_call_operand.hbm [shape: f32[16,128], index: 5, kind: output, shape index: {}]  }
   0x1   :  { %11 = vsyncpa [#allocation6], 0  ;;  %s30_s20 = sshll.u32 %s625_s1, 4  ;;  %s31_s20 = int_to_ptr.hbm [resolvable:$true] %s30_s20 }
   0x2   :  { %12 = vsyncpa [#allocation4], 0  ;;  %s544_s21 = smov [#allocation5]   ;;  %s17_s25 = sshll.u32 %s624_s0, 4  ;;  %s18_s25 = int_to_ptr.hbm [resolvable:$true] %s17_s25 }
   0x3   :  { %s32_s22 = sshll.u32 %s544_s21, 4  ;;  %s545_s26 = smov 64   ;;  %s33_s22 = int_to_ptr.vmem [resolvable:$true] %s32_s22 }
   0x4   :  { %s546_s27 = smov 4   ;;  %s547_s28 = smov [#allocation2]  }
   0x5   :  { %38 = dma.hbm_to_vmem [thread:$0]  %s31_s20, 1024, %s33_s22, [#allocation6], %s545_s26, %s545_s26, %s546_s27  }
   0x6   :  { %s19_s29 = sshll.u32 %s547_s28, 4  ;;  %s548_s30 = smov 128   ;;  %s20_s29 = int_to_ptr.vmem [resolvable:$true] %s19_s29 }
   0x7   :  { %s549_s6 = smov 8   ;;  %s45_s8 = sshll.u32 %s627_s3, 4  ;;  %s46_s8 = int_to_ptr.hbm [resolvable:$true] %s45_s8 }
   0x8   :  { %25 = dma.hbm_to_vmem [thread:$0]  %s18_s25, 256, %s20_s29, [#allocation3], %s548_s30, %s548_s30, %s549_s6  }
   0x9   :  { %s550_s9 = smov [#allocation7]  }
   0xa   :  { %s47_s0 = sshll.u32 %s550_s9, 4  ;;  %s48_s0 = int_to_ptr.vmem [resolvable:$true] %s47_s0 }
   0xb   :  { %53 = dma.hbm_to_vmem [thread:$0]  %s46_s8, 1024, %s48_s0, [#allocation6], %s545_s26, %s545_s26, %s546_s27  }
   0xc   :  { %538 = dma.done.wait [#allocation3], 256  }
   0xd   :  { %539 = vsyncadd [#allocation3], 4294967040 }
   0xe   :  { %540 = dma.done.wait [#allocation6], 2048  }
   0xf   :  { %541 = vsyncadd [#allocation6], 4294965248  ;;  %v419_v0 = vld [vmem:[#allocation5 + $0x38] sm:$0xff]  ;;  %v418_v1 = vld [vmem:[#allocation5 + $0x30] sm:$0xff]  ;;  %s551_s12 = smov [#allocation8]   ;;  %s332_s16 = sshll.u32 %s629_s5, 4  ;;  %s333_s16 = int_to_ptr.hbm [resolvable:$true] %s332_s16 }
  0x10   :  { %139 = vmatpush.bf16.msra.mxu0 %v419_v0  ;;  %v417_v2 = vld [vmem:[#allocation5 + $0x28] sm:$0xff]  ;;  %v416_v3 = vld [vmem:[#allocation5 + $0x20] sm:$0xff]  ;;  %v415_v4 = vld [vmem:[#allocation5 + $0x18] sm:$0xff]  ;;  %s330_s13 = sshll.u32 %s551_s12, 4  ;;  %s331_s13 = int_to_ptr.vmem [resolvable:$true] %s330_s13 }
  0x11   :  { %v414_v5 = vld [vmem:[#allocation5 + $0x10] sm:$0xff]  ;;  %v413_v6 = vld [vmem:[#allocation5 + $0x8] sm:$0xff]  ;;  %v412_v7 = vld [vmem:[#allocation5] sm:$0xff] }
  0x12   :  { %v68_v8 = vld [vmem:[#allocation2] sm:$0xff]  ;;  %v69_v9 = vld [vmem:[#allocation2 + $0x8] sm:$0xff]  ;;  %v425_v18 = vld [vmem:[#allocation7 + $0x28] sm:$0xff] }
  0x13   :  { %v70_v10 = vpack.c.bf16 %v69_v9, %v68_v8  ;;  %v436_v11 = vld [vmem:[%s626_s2] ss:$0 sm:$0xff]  ;;  %v427_v12 = vld [vmem:[#allocation7 + $0x38] sm:$0xff]  ;;  %v424_v23 = vld [vmem:[#allocation7 + $0x20] sm:$0xff] }
  0x14   :  { %140 = vmatpush.bf16.msra.mxu0 %v418_v1  ;;  %310 = vmatpush.bf16.msra.mxu1 %v427_v12  ;;  %v426_v16 = vld [vmem:[#allocation7 + $0x30] sm:$0xff]  ;;  %v423_v29 = vld [vmem:[#allocation7 + $0x18] sm:$0xff]  ;;  %v421_v43 = vld [vmem:[#allocation7 + $0x8] sm:$0xff] }
  0x15   :  { %v422_v35 = vld [vmem:[#allocation7 + $0x10] sm:$0xff]  ;;  %v420_v50 = vld [vmem:[#allocation7] sm:$0xff] }
  0x18   :  { %141 = vmatpush.bf16.msra.mxu0 %v417_v2  ;;  %311 = vmatpush.bf16.msra.mxu1 %v426_v16 }
  0x1c   :  { %142 = vmatpush.bf16.msra.mxu0 %v416_v3  ;;  %312 = vmatpush.bf16.msra.mxu1 %v425_v18 }
  0x20   :  { %143 = vmatpush.bf16.msra.mxu0 %v415_v4  ;;  %313 = vmatpush.bf16.msra.mxu1 %v424_v23 }
  0x24   :  { %144 = vmatpush.bf16.msra.mxu0 %v414_v5  ;;  %314 = vmatpush.bf16.msra.mxu1 %v423_v29 }
  0x28   :  { %145 = vmatpush.bf16.msra.mxu0 %v413_v6  ;;  %315 = vmatpush.bf16.msra.mxu1 %v422_v35 }
  0x2c   :  { %146 = vmatpush.bf16.msra.mxu0 %v412_v7  ;;  %316 = vmatpush.bf16.msra.mxu1 %v421_v43 }
  0x2f   :  { %147 = vmatmul.bf16.vlgmr.msra.gmra.mxu0 %v70_v10 }
  0x30   :  { %317 = vmatpush.bf16.msra.mxu1 %v420_v50 }
  0xac   :  { %v148_v13 = vpop.f32.mrf.mxu0 }
  0xad   :  { %v597_v14 = vadd.f32 %v436_v11, %v148_v13 }
  0xaf   :  { %v600_v15 = vmul.f32 0.70710677, %v597_v14 }
  0xb1   :  { %v157_v17 = vmul.f32 %v600_v15, %v600_v15 }
  0xb3   :  { %v158_v19 = vmin.f32 %v157_v17, 16.0 }
  0xb4   :  { %v150_v20 = vpop.f32.mrf.mxu0 }
  0xb5   :  { %v159_v21 = vmul.f32 2.1237322e-06, %v158_v19  ;;  %v604_v22 = vadd.f32 %v436_v11, %v150_v20  ;;  %v170_v24 = vmul.f32 3.8918573e-05, %v158_v19 }
  0xb7   :  { %v160_v25 = vadd.f32 0.00028619796, %v159_v21  ;;  %v607_v26 = vmul.f32 0.70710677, %v604_v22  ;;  %v171_v27 = vadd.f32 0.001143296, %v170_v24 }
  0xb9   :  { %v197_v28 = vmul.f32 %v607_v26, %v607_v26  ;;  %v161_v30 = vmul.f32 %v160_v25, %v158_v19  ;;  %v172_v31 = vmul.f32 %v171_v27, %v158_v19 }
  0xbb   :  { %v198_v32 = vmin.f32 %v197_v28, 16.0  ;;  %v173_v33 = vadd.f32 0.014752088, %v172_v31  ;;  %v162_v37 = vadd.f32 0.0036580483, %v161_v30 }
  0xbd   :  { %v199_v34 = vmul.f32 2.1237322e-06, %v198_v32  ;;  %v210_v36 = vmul.f32 3.8918573e-05, %v198_v32  ;;  %v174_v38 = vmul.f32 %v173_v33, %v158_v19  ;;  %v163_v45 = vmul.f32 %v162_v37, %v158_v19 }
  0xbe   :  { %v154_v37 = vmul.f32 0.5, %v604_v22 }
  0xbf   :  { %v200_v39 = vadd.f32 0.00028619796, %v199_v34  ;;  %v211_v40 = vadd.f32 0.001143296, %v210_v36  ;;  %v175_v41 = vadd.f32 0.112945676, %v174_v38 }
  0xc0   :  { %v164_v52 = vadd.f32 0.05243302, %v163_v45  ;;  %v153_v36 = vmul.f32 0.5, %v597_v14 }
  0xc1   :  { %v201_v42 = vmul.f32 %v200_v39, %v198_v32  ;;  %v212_v44 = vmul.f32 %v211_v40, %v198_v32  ;;  %v176_v46 = vmul.f32 %v175_v41, %v158_v19 }
  0xc2   :  { %v165_v58 = vmul.f32 %v164_v52, %v158_v19 }
  0xc3   :  { %v202_v47 = vadd.f32 0.0036580483, %v201_v42  ;;  %v213_v48 = vadd.f32 0.014752088, %v212_v44  ;;  %v177_v49 = vadd.f32 0.4994258, %v176_v46 }
  0xc4   :  { %v166_v62 = vadd.f32 0.18741608, %v165_v58 }
  0xc5   :  { %v214_v51 = vmul.f32 %v213_v48, %v198_v32  ;;  %v178_v53 = vmul.f32 %v177_v49, %v158_v19  ;;  %v203_v54 = vmul.f32 %v202_v47, %v198_v32 }
  0xc6   :  { %v167_v3 = vmul.f32 %v166_v62, %v158_v19 }
  0xc7   :  { %v215_v55 = vadd.f32 0.112945676, %v214_v51  ;;  %v179_v56 = vadd.f32 1.0, %v178_v53  ;;  %v204_v59 = vadd.f32 0.05243302, %v203_v54 }
  0xc8   :  { %v168_v9 = vadd.f32 1.1283791, %v167_v3 }
  0xc9   :  { %v216_v57 = vmul.f32 %v215_v55, %v198_v32  ;;  %438 = vrcp.f32 %v179_v56  ;;  %v205_v63 = vmul.f32 %v204_v59, %v198_v32  ;;  %v191_v6 = vand.u32 2147483648, %v179_v56 }
  0xca   :  { %v189_v8 = vand.u32 2147483647, %v179_v56  ;;  %vm185_vm1 = vweird.f32 %v179_v56  ;;  %v169_v18 = vmul.f32 %v168_v9, %v600_v15 }
  0xcb   :  { %v217_v60 = vadd.f32 0.4994258, %v216_v57  ;;  %v206_v4 = vadd.f32 0.18741608, %v205_v63  ;;  %v192_v13 = vor.u32 1.1754944e-38, %v191_v6 }
  0xcc   :  { %vm190_vm3 = vcmp.eq.f32.partialorder %v189_v8, 8.507059e+37 }
  0xcd   :  { %v218_v61 = vmul.f32 %v217_v60, %v198_v32  ;;  %v207_v11 = vmul.f32 %v206_v4, %v198_v32 }
  0xcf   :  { %v219_v0 = vadd.f32 1.0, %v218_v61  ;;  %v439_v1 = vpop.eup %438  ;;  %v208_v21 = vadd.f32 1.1283791, %v207_v11 }
  0xd0   :  { %v181_v2 = vmul.f32 %v439_v1, %v179_v56  ;;  %vm186_vm0 = vweird.f32 %v439_v1 }
  0xd1   :  { %440 = vrcp.f32 %v219_v0  ;;  %vm187_vm2 = vmor %vm185_vm1, %vm186_vm0  ;;  %v231_v23 = vand.u32 2147483648, %v219_v0  ;;  %v229_v27 = vand.u32 2147483647, %v219_v0  ;;  %vm225_vm5 = vweird.f32 %v219_v0 }
  0xd2   :  { %v182_v5 = vsub.f32 1.0, %v181_v2  ;;  %v209_v30 = vmul.f32 %v208_v21, %v607_v26  ;;  %v437_v26 = vld [vmem:[%s628_s4] ss:$0 sm:$0xff] }
  0xd3   :  { %v232_v29 = vor.u32 1.1754944e-38, %v231_v23  ;;  %vm230_vm7 = vcmp.eq.f32.partialorder %v229_v27, 8.507059e+37 }
  0xd4   :  { %v183_v7 = vmul.f32 %v439_v1, %v182_v5 }
  0xd6   :  { %v184_v12 = vadd.f32 %v439_v1, %v183_v7 }
  0xd7   :  { %v441_v10 = vpop.eup %440 }
  0xd8   :  { %v221_v16 = vmul.f32 %v441_v10, %v219_v0  ;;  %v188_v17 = vsel %vm187_vm2, %v439_v1, %v184_v12  ;;  %vm226_vm4 = vweird.f32 %v441_v10 }
  0xd9   :  { %v193_v20 = vsel %vm190_vm3, %v192_v13, %v188_v17  ;;  %vm227_vm6 = vmor %vm225_vm5, %vm226_vm4 }
  0xda   :  { %v222_v19 = vsub.f32 1.0, %v221_v16  ;;  %v194_v24 = vmul.f32 %v193_v20, %v169_v18 }
  0xdc   :  { %v223_v25 = vmul.f32 %v441_v10, %v222_v19  ;;  %v378_v31 = vclamps-f32 %v194_v24, 1.0 }
  0xde   :  { %v224_v28 = vadd.f32 %v441_v10, %v223_v25  ;;  %v237_v35 = vadd.f32 1.0, %v378_v31 }
  0xe0   :  { %v228_v32 = vsel %vm227_vm6, %v441_v10, %v224_v28  ;;  %v239_v39 = vmul.f32 %v237_v35, %v153_v36 }
  0xe1   :  { %v233_v33 = vsel %vm230_vm7, %v232_v29, %v228_v32 }
  0xe2   :  { %v234_v34 = vmul.f32 %v233_v33, %v209_v30 }
  0xe4   :  { %v379_v15 = vclamps-f32 %v234_v34, 1.0 }
  0xe6   :  { %v238_v38 = vadd.f32 1.0, %v379_v15 }
  0xe8   :  { %v240_v40 = vmul.f32 %v238_v38, %v154_v37 }
  0xea   :  { %v241_v41 = vpack.c.bf16 %v240_v40, %v239_v39 }
  0xec   :  { %318 = vmatmul.bf16.vlgmr.msra.gmra.mxu1 %v241_v41 }
 0x169   :  { %v319_v42 = vpop.f32.mrf.mxu1 }
 0x16a   :  { %v320_v43 = vadd.f32 %v437_v26, %v319_v42 }
 0x16c   :  { %324 = vst [vmem:[#allocation8] sm:$0xff] %v320_v43 }
 0x171   :  { %v321_v14 = vpop.f32.mrf.mxu1 }
 0x172   :  { %v322_v22 = vadd.f32 %v437_v26, %v321_v14 }
 0x174   :  { %325 = vst [vmem:[#allocation8 + $0x8] sm:$0xff] %v322_v22 }
 0x175   :  { %338 = dma.vmem_to_hbm [thread:$0]  %s331_s13, 256, %s333_s16, [#allocation4], %s548_s30, %s548_s30, %s549_s6  }
 0x176   :  { %542 = dma.done.wait [#allocation4], 256  }
 0x177   :  { %543 = vsyncadd [#allocation4], 4294967040 }
 0x178   :  { %343 = vsyncpa [#allocation3], 1 }
 0x179   :  { %344 = vsyncpa [#allocation6], 1 }
 0x17a   :  { %345 = vsyncpa [#allocation4], 1 }

</bundles_post_ra>
